<compile_context>
chip_gen: v7x
topology: tpu7x:2x2x1
jax: 0.10.0
libtpu: 0.0.40
codegen_flags: <defaults>
</compile_context>

<pallas_src>
import jax
import jax.numpy as jnp
from jax.experimental import pallas as pl
from jax.experimental.pallas import tpu as pltpu

# --- "config" C.* (small, consistent with the module) ---
FILTERS = 4              # C.FILTERS
BOARD_SIZE = 16          # C.BOARD_SIZE  -> BOARD_SIZE**2 = 256
VALUE_HIDDEN_UNITS = 32  # C.VALUE_HIDDEN_UNITS
BN_EPS = 1e-5

HIDDEN_PAD = 128                  # hidden dim padded 32 -> 128 lanes (exact)
TB_MAX = 2048                     # max batch-tile rows (f32: 2 x 8 MiB x bufs)
VMEM_LIMIT_BYTES = 40 * 1024 * 1024


def _round_up(x, m):
    return (x + m - 1) // m * m


def _cdiv(a, b):
    return -(-a // b)


def _make_value_head_kernel(n_ch, p):
    def kernel(s_ref, x_ref, w1_ref, b1_ref, w2_ref, b2_ref, out_ref):
        """Fused conv1x1+BN (per-channel scale) + Linear1 + ReLU + Linear2 + tanh.

        s_ref : (C,)            SMEM  per-channel scale bn_scale * conv_w[c]
        x_ref : (TB, C*P)       VMEM  activations (f32 or bf16), NCHW-flattened
        w1_ref: (P, HIDDEN_PAD) VMEM  linear1 weight (in x out), hidden padded
        b1_ref: (1, HIDDEN_PAD) VMEM  linear1 bias + folded conv/BN bias term
        w2_ref: (1, HIDDEN_PAD) VMEM  linear2 weight row, hidden padded
        b2_ref: (1, 1)          VMEM  linear2 bias
        out_ref:(TB, 1)         VMEM
        """
        # conv1x1 + eval-BN as a per-channel scaled channel sum (VPU, f32 acc).
        y = s_ref[0] * x_ref[:, 0:p].astype(jnp.float32)
        for c in range(1, n_ch):
            y = y + s_ref[c] * x_ref[:, c * p:(c + 1) * p].astype(jnp.float32)

        # Linear1 + ReLU: (TB, P) @ (P, 128) on the MXU, f32 accumulation.
        h = jnp.dot(y, w1_ref[...], preferred_element_type=jnp.float32)
        h = jnp.maximum(h + b1_ref[...], 0.0)

        # Linear2 (output width 1): VPU multiply + lane reduce, then tanh (EUP).
        v = jnp.sum(h * w2_ref[...], axis=-1, keepdims=True) + b2_ref[...]
        # TODO(synk): lane-dense (1, TB) output relayout (review item) skipped;
        #             the (TB, 1) column store is hidden under HBM slack here.
        out_ref[...] = jnp.tanh(v).astype(out_ref.dtype)

    return kernel


def prepare_value_head_params(params):
    """One-time host-side fold/pad (hoisted out of the per-call wrapper)."""
    bn_scale = params["bn_gamma"][0] / jnp.sqrt(params["bn_var"][0] + BN_EPS)
    bn_bias = params["bn_beta"][0] - params["bn_mean"][0] * bn_scale

    # Per-channel conv*BN scale; the conv/BN bias constant folds into b1 below.
    scales = (bn_scale * params["conv_w"]).astype(jnp.float32)          # (C,)
    k0 = bn_scale * params["conv_b"][0] + bn_bias                       # scalar

    w1_t = params["w1"].T.astype(jnp.float32)                           # (P, H)
    p_dim, h_dim = w1_t.shape
    b1_fold = params["b1"].astype(jnp.float32) + k0 * jnp.sum(w1_t, axis=0)

    w1_p = jnp.zeros((p_dim, HIDDEN_PAD), jnp.float32).at[:, :h_dim].set(w1_t)
    b1_p = jnp.zeros((1, HIDDEN_PAD), jnp.float32).at[:, :h_dim].set(b1_fold)
    w2_p = jnp.zeros((1, HIDDEN_PAD), jnp.float32).at[:, :h_dim].set(
        params["w2"].astype(jnp.float32))
    b2 = params["b2"].reshape(1, 1).astype(jnp.float32)
    return {"scales": scales, "w1": w1_p, "b1": b1_p, "w2": w2_p, "b2": b2}


def value_head_pallas(x, prep):
    """x: (B, C, H, W) NCHW, f32 or bf16 (producer dtype, no wrapper cast).
    Returns (B, 1) float32."""
    B, C, H, W = x.shape
    P = H * W
    K = C * P
    assert prep["w1"].shape[0] == P, (prep["w1"].shape, P)
    Hp = prep["w1"].shape[1]

    x_flat = x.reshape(B, K)                    # free reshape, keeps dtype

    # Sublane alignment for the batch tile (8 for f32, 16 for bf16, 32 int8).
    row_align = max(8, 32 // jnp.dtype(x.dtype).itemsize)

    b_run = B
    if B < row_align:
        # Tiny batches only: pad rows to the sublane minimum (negligible copy).
        x_flat = jnp.pad(x_flat, ((0, row_align - B), (0, 0)))
        b_run = row_align

    # Batch tile: as big as VMEM allows, but keep >= 2 grid steps when there is
    # enough work so both v7x TensorCores get batch rows.  Ragged batches use a
    # cdiv grid with a partial last block instead of a full jnp.pad copy of x.
    tb = min(TB_MAX, _round_up(b_run, row_align))
    n_steps = _cdiv(b_run, tb)
    if n_steps < 2 and b_run > row_align:
        tb = _round_up(_cdiv(b_run, 2), row_align)
        n_steps = _cdiv(b_run, tb)

    kernel = _make_value_head_kernel(C, P)
    out = pl.pallas_call(
        kernel,
        out_shape=jax.ShapeDtypeStruct((b_run, 1), jnp.float32),
        grid=(n_steps,),
        in_specs=[
            pl.BlockSpec(memory_space=pltpu.MemorySpace.SMEM),  # scales (C,)
            pl.BlockSpec((tb, K), lambda i: (i, 0)),            # x: streamed
            pl.BlockSpec((P, Hp), lambda i: (0, 0)),            # w1: resident
            pl.BlockSpec((1, Hp), lambda i: (0, 0)),            # b1: resident
            pl.BlockSpec((1, Hp), lambda i: (0, 0)),            # w2: resident
            pl.BlockSpec((1, 1), lambda i: (0, 0)),             # b2: resident
        ],
        out_specs=pl.BlockSpec((tb, 1), lambda i: (i, 0)),
        compiler_params=pltpu.CompilerParams(
            dimension_semantics=("parallel",),   # batch axis -> both TCs (v7x)
            vmem_limit_bytes=VMEM_LIMIT_BYTES),
    )(prep["scales"], x_flat, prep["w1"], prep["b1"], prep["w2"], prep["b2"])

    return out[:B]


def value_head_reference(x, params):
    """Pure-JAX reference mirroring the PyTorch forward (eval mode)."""
    B = x.shape[0]
    conv = jnp.einsum("bchw,c->bhw", x, params["conv_w"]) + params["conv_b"][0]
    bn = ((conv - params["bn_mean"][0])
          / jnp.sqrt(params["bn_var"][0] + BN_EPS)
          * params["bn_gamma"][0] + params["bn_beta"][0])
    flat = bn.reshape(B, BOARD_SIZE ** 2)
    h = jnp.maximum(flat @ params["w1"].T + params["b1"], 0.0)
    v = jnp.tanh(h @ params["w2"].T + params["b2"])
    return v


def init_params(key):
    ks = jax.random.split(key, 6)
    P = BOARD_SIZE ** 2
    return {
        # Conv2d(FILTERS, 1, kernel_size=1): weight (1, FILTERS, 1, 1) -> (FILTERS,)
        "conv_w": 0.1 * jax.random.normal(ks[0], (FILTERS,), jnp.float32),
        "conv_b": 0.1 * jax.random.normal(ks[1], (1,), jnp.float32),
        # BatchNorm2d(1) (eval-mode running stats / affine params)
        "bn_gamma": jnp.array([1.1], jnp.float32),
        "bn_beta": jnp.array([-0.05], jnp.float32),
        "bn_mean": jnp.array([0.02], jnp.float32),
        "bn_var": jnp.array([0.9], jnp.float32),
        # Linear(P, VALUE_HIDDEN_UNITS): weight (HIDDEN, P)
        "w1": 0.05 * jax.random.normal(ks[2], (VALUE_HIDDEN_UNITS, P), jnp.float32),
        "b1": 0.05 * jax.random.normal(ks[3], (VALUE_HIDDEN_UNITS,), jnp.float32),
        # Linear(VALUE_HIDDEN_UNITS, 1): weight (1, HIDDEN)
        "w2": 0.05 * jax.random.normal(ks[4], (1, VALUE_HIDDEN_UNITS), jnp.float32),
        "b2": 0.05 * jax.random.normal(ks[5], (1,), jnp.float32),
    }


if __name__ == "__main__":
    key = jax.random.PRNGKey(0)
    pkey, k1, k2, k3 = jax.random.split(key, 4)
    params = init_params(pkey)
    prep = prepare_value_head_params(params)   # folded/padded once per param set

    # f32, tiny batch (pad-to-sublane path).
    B = 2
    x = jax.random.normal(k1, (B, FILTERS, BOARD_SIZE, BOARD_SIZE), jnp.float32)
    out = jax.block_until_ready(value_head_pallas(x, prep))
    ref = value_head_reference(x, params)
    assert out.shape == (B, 1), out.shape
    assert jnp.allclose(out, ref, atol=1e-5, rtol=1e-5), (out, ref)

    # f32, ragged batch: cdiv grid with a partial last block, no jnp.pad copy.
    B2 = 10
    x2 = jax.random.normal(k2, (B2, FILTERS, BOARD_SIZE, BOARD_SIZE), jnp.float32)
    out2 = jax.block_until_ready(value_head_pallas(x2, prep))
    ref2 = value_head_reference(x2, params)
    assert out2.shape == (B2, 1), out2.shape
    assert jnp.allclose(out2, ref2, atol=1e-5, rtol=1e-5), (out2, ref2)

    # bf16 activations straight from the "producer" (no wrapper cast);
    # the kernel accumulates in f32.
    B3 = 16
    x3 = jax.random.normal(
        k3, (B3, FILTERS, BOARD_SIZE, BOARD_SIZE), jnp.float32).astype(jnp.bfloat16)
    out3 = jax.block_until_ready(value_head_pallas(x3, prep))
    ref3 = value_head_reference(x3.astype(jnp.float32), params)
    assert out3.shape == (B3, 1), out3.shape
    assert jnp.allclose(out3, ref3, atol=1e-4, rtol=1e-4), (out3, ref3)

    print("KERNEL_OK")
</pallas_src>

<mosaic_0001>
module attributes {stable_mosaic.version = 11 : i64} {
  func.func @kernel(%arg0: i32, %arg1: memref<4xf32, #tpu.memory_space<smem>>, %arg2: memref<8x1024xf32, #tpu.memory_space<vmem>>, %arg3: memref<256x128xf32, #tpu.memory_space<vmem>>, %arg4: memref<1x128xf32, #tpu.memory_space<vmem>>, %arg5: memref<1x128xf32, #tpu.memory_space<vmem>>, %arg6: memref<1x1xf32, #tpu.memory_space<vmem>>, %arg7: memref<8x1xf32, #tpu.memory_space<vmem>>) attributes {dimension_semantics = [#tpu.dimension_semantics<parallel>], iteration_bounds = array<i64: 1>, scalar_prefetch = 0 : i64, scratch_operands = 0 : i64, tpu.core_type = #tpu.core_type<tc>, window_params = [{transform_indices = @transform_0, window_bounds = array<i64: 4>}, {transform_indices = @transform_1, window_bounds = array<i64: 8, 1024>}, {pipeline_mode = #tpu.pipeline_mode<synchronous>, transform_indices = @transform_2, window_bounds = array<i64: 256, 128>}, {pipeline_mode = #tpu.pipeline_mode<synchronous>, transform_indices = @transform_3, window_bounds = array<i64: 1, 128>}, {pipeline_mode = #tpu.pipeline_mode<synchronous>, transform_indices = @transform_4, window_bounds = array<i64: 1, 128>}, {pipeline_mode = #tpu.pipeline_mode<synchronous>, transform_indices = @transform_5, window_bounds = array<i64: 1, 1>}, {transform_indices = @transform_6, window_bounds = array<i64: 8, 1>}]} {
    %c0 = arith.constant 0 : index
    %0 = memref.load %arg1[%c0] : memref<4xf32, #tpu.memory_space<smem>>
    %c0_0 = arith.constant 0 : index
    %c0_1 = arith.constant 0 : index
    %1 = vector.load %arg2[%c0_0, %c0_1] : memref<8x1024xf32, #tpu.memory_space<vmem>>, vector<8x256xf32>
    %2 = vector.broadcast %0 : f32 to vector<8x256xf32>
    %3 = arith.mulf %2, %1 : vector<8x256xf32>
    %c1 = arith.constant 1 : index
    %4 = memref.load %arg1[%c1] : memref<4xf32, #tpu.memory_space<smem>>
    %c0_2 = arith.constant 0 : index
    %c256 = arith.constant 256 : index
    %5 = vector.load %arg2[%c0_2, %c256] : memref<8x1024xf32, #tpu.memory_space<vmem>>, vector<8x256xf32>
    %6 = vector.broadcast %4 : f32 to vector<8x256xf32>
    %7 = arith.mulf %6, %5 : vector<8x256xf32>
    %8 = arith.addf %3, %7 : vector<8x256xf32>
    %c2 = arith.constant 2 : index
    %9 = memref.load %arg1[%c2] : memref<4xf32, #tpu.memory_space<smem>>
    %c0_3 = arith.constant 0 : index
    %c512 = arith.constant 512 : index
    %10 = vector.load %arg2[%c0_3, %c512] : memref<8x1024xf32, #tpu.memory_space<vmem>>, vector<8x256xf32>
    %11 = vector.broadcast %9 : f32 to vector<8x256xf32>
    %12 = arith.mulf %11, %10 : vector<8x256xf32>
    %13 = arith.addf %8, %12 : vector<8x256xf32>
    %c3 = arith.constant 3 : index
    %14 = memref.load %arg1[%c3] : memref<4xf32, #tpu.memory_space<smem>>
    %c0_4 = arith.constant 0 : index
    %c768 = arith.constant 768 : index
    %15 = vector.load %arg2[%c0_4, %c768] : memref<8x1024xf32, #tpu.memory_space<vmem>>, vector<8x256xf32>
    %16 = vector.broadcast %14 : f32 to vector<8x256xf32>
    %17 = arith.mulf %16, %15 : vector<8x256xf32>
    %18 = arith.addf %13, %17 : vector<8x256xf32>
    %c0_5 = arith.constant 0 : index
    %c0_6 = arith.constant 0 : index
    %19 = vector.load %arg3[%c0_5, %c0_6] : memref<256x128xf32, #tpu.memory_space<vmem>>, vector<256x128xf32>
    %cst = arith.constant dense<0.000000e+00> : vector<8x128xf32>
    %20 = tpu.matmul %18, %19, %cst {dimension_numbers = #tpu.dot_dimension_numbers<[1], [0], [0], [1], [0, 0, 1, 1], [], []>} : vector<8x256xf32>, vector<256x128xf32>, vector<8x128xf32> -> vector<8x128xf32>
    %c0_7 = arith.constant 0 : index
    %c0_8 = arith.constant 0 : index
    %21 = vector.load %arg4[%c0_7, %c0_8] : memref<1x128xf32, #tpu.memory_space<vmem>>, vector<1x128xf32>
    %22 = vector.broadcast %21 : vector<1x128xf32> to vector<8x128xf32>
    %23 = arith.addf %20, %22 : vector<8x128xf32>
    %cst_9 = arith.constant 0.000000e+00 : f32
    %24 = vector.broadcast %cst_9 : f32 to vector<8x128xf32>
    %25 = arith.maximumf %23, %24 : vector<8x128xf32>
    %c0_10 = arith.constant 0 : index
    %c0_11 = arith.constant 0 : index
    %26 = vector.load %arg5[%c0_10, %c0_11] : memref<1x128xf32, #tpu.memory_space<vmem>>, vector<1x128xf32>
    %27 = vector.broadcast %26 : vector<1x128xf32> to vector<8x128xf32>
    %28 = arith.mulf %25, %27 : vector<8x128xf32>
    %cst_12 = arith.constant dense<0.000000e+00> : vector<8xf32>
    %29 = vector.multi_reduction <add>, %28, %cst_12 [1] : vector<8x128xf32> to vector<8xf32>
    %30 = vector.shape_cast %29 : vector<8xf32> to vector<8x1xf32>
    %c0_13 = arith.constant 0 : index
    %c0_14 = arith.constant 0 : index
    %31 = vector.load %arg6[%c0_13, %c0_14] : memref<1x1xf32, #tpu.memory_space<vmem>>, vector<1x1xf32>
    %32 = vector.broadcast %31 : vector<1x1xf32> to vector<8x1xf32>
    %33 = arith.addf %30, %32 : vector<8x1xf32>
    %34 = math.tanh %33 : vector<8x1xf32>
    %c0_15 = arith.constant 0 : index
    %c0_16 = arith.constant 0 : index
    %35 = vector.load %arg7[%c0_15, %c0_16] : memref<8x1xf32, #tpu.memory_space<vmem>>, vector<8x1xf32>
    tpu.vector_store %arg7[%c0_15, %c0_16], %34 {strides = array<i32>} : memref<8x1xf32, #tpu.memory_space<vmem>>, vector<8x1xf32>,
    return
  }
  func.func @transform_0(%arg0: i32) -> i32 {
    %c0_i32 = arith.constant 0 : i32
    %c0_i32_0 = arith.constant 0 : i32
    return %c0_i32 : i32
  }
  func.func @transform_1(%arg0: i32) -> (i32, i32) {
    %c0_i32 = arith.constant 0 : i32
    %c0_i32_0 = arith.constant 0 : i32
    return %arg0, %c0_i32 : i32, i32
  }
  func.func @transform_2(%arg0: i32) -> (i32, i32) {
    %c0_i32 = arith.constant 0 : i32
    %c0_i32_0 = arith.constant 0 : i32
    %c0_i32_1 = arith.constant 0 : i32
    return %c0_i32, %c0_i32_0 : i32, i32
  }
  func.func @transform_3(%arg0: i32) -> (i32, i32) {
    %c0_i32 = arith.constant 0 : i32
    %c0_i32_0 = arith.constant 0 : i32
    %c0_i32_1 = arith.constant 0 : i32
    return %c0_i32, %c0_i32_0 : i32, i32
  }
  func.func @transform_4(%arg0: i32) -> (i32, i32) {
    %c0_i32 = arith.constant 0 : i32
    %c0_i32_0 = arith.constant 0 : i32
    %c0_i32_1 = arith.constant 0 : i32
    return %c0_i32, %c0_i32_0 : i32, i32
  }
  func.func @transform_5(%arg0: i32) -> (i32, i32) {
    %c0_i32 = arith.constant 0 : i32
    %c0_i32_0 = arith.constant 0 : i32
    %c0_i32_1 = arith.constant 0 : i32
    return %c0_i32, %c0_i32_0 : i32, i32
  }
  func.func @transform_6(%arg0: i32) -> (i32, i32) {
    %c0_i32 = arith.constant 0 : i32
    %c0_i32_0 = arith.constant 0 : i32
    return %arg0, %c0_i32 : i32, i32
  }
}

</mosaic_0001>

<bundles_post_ra>
// kernel: tpu_custom_call.1
= control target key start
LH: loop header
LB: loop body
LE: loop exit
PB: predicated region body
PF: predicated region fallthrough
CT: control target
= control target key end

     0   :  { %s465_s0 = inlined_call_operand.vmem [shape: f32[4], index: 0, kind: input, shape index: {}]   ;;  %s466_s1 = inlined_call_operand.hbm [shape: f32[8,1024], index: 1, kind: input, shape index: {}]   ;;  %s467_s2 = inlined_call_operand.hbm [shape: f32[256,128], index: 2, kind: input, shape index: {}]   ;;  %s468_s3 = inlined_call_operand.vmem [shape: f32[1,128], index: 3, kind: input, shape index: {}]   ;;  %s469_s4 = inlined_call_operand.vmem [shape: f32[1,128], index: 4, kind: input, shape index: {}]   ;;  %s470_s5 = inlined_call_operand.<no memory space> [shape: f32[1,1], index: 5, kind: input, shape index: {}]   ;;  %s471_s6 = inlined_call_operand.vmem [shape: f32[8,1], index: 6, kind: output, shape index: {}]  }
   0x1   :  { %v11_v0 = vstv %s470_s5 }
   0x2   :  { %12 = vst [vmem:[#allocation2] sm:$0x1] %v11_v0 }
   0x3   :  { %13 = vsyncpa [#allocation5], 0 }
   0x4   :  { %14 = vsyncpa [#allocation4], 0  ;;  %s22_s25 = sshll.u32 %s465_s0, 4  ;;  %s23_s25 = int_to_ptr.vmem [resolvable:$true] %s22_s25 }
   0x5   :  { %15 = vsyncpa [#allocation8], 0  ;;  %s312_s26 = scalar_lea.vmem %s23_s25, 16  ;;  %p317_p1 = scmp.lt.s32.totalorder %s23_s25, %s23_s25 }
   0x6   :  { %p313_p0 = scmp.ne.s32.totalorder %s23_s25, %s312_s26  ;;  %p318_p2 = scmp.lt.s32.totalorder %s312_s26, %s312_s26 }
   0x8   :  { %p319_p3 = por %p318_p2, %p317_p1 }
   0xa   :  { %p320_p4 = pnand %p319_p3, %p313_p0 }
   0xc   :  { %323 = shalt.err (!%p320_p4)
}
   0xd   :  { %s374_s27 = smov [#allocation3]   ;;  %s375_s28 = smov [#allocation6]  }
   0xe   :  { %25 = dma.vmem_to_smem %s23_s25, 16, %s374_s27, [#allocation5]  }
   0xf   :  { %s32_s5 = sshll.u32 %s375_s28, 4  ;;  %s376_s29 = smov [#allocation7]   ;;  %s33_s5 = int_to_ptr.vmem [resolvable:$true] %s32_s5 }
  0x10   :  { %s41_s30 = sshll.u32 %s376_s29, 4  ;;  %s324_s0 = scalar_lea.hbm %s466_s1, 1024  ;;  %s42_s30 = int_to_ptr.vmem [resolvable:$true] %s41_s30 }
  0x11   :  { %p325_p5 = scmp.ne.s32.totalorder %s466_s1, %s324_s0  ;;  %p328_p6 = scmp.lt.u32.totalorder %s324_s0, %s466_s1 }
  0x13   :  { %p330_p7 = pnand %p328_p6, %p325_p5 }
  0x15   :  { %333 = shalt.err (!%p330_p7)
}
  0x16   :  { %s334_s13 = scalar_lea.vmem %s33_s5, 1024  ;;  %p339_p9 = scmp.lt.s32.totalorder %s33_s5, %s33_s5 }
  0x17   :  { %p335_p8 = scmp.ne.s32.totalorder %s33_s5, %s334_s13  ;;  %p340_p10 = scmp.lt.s32.totalorder %s334_s13, %s334_s13 }
  0x19   :  { %p341_p11 = por %p340_p10, %p339_p9 }
  0x1b   :  { %p342_p12 = pnand %p341_p11, %p335_p8 }
  0x1d   :  { %345 = shalt.err (!%p342_p12)
}
  0x1e   :  { %35 = dma.hbm_to_vmem [thread:$0]  %s466_s1, 1024, %s33_s5, [#allocation4]  }
  0x1f   :  { %s346_s18 = scalar_lea.hbm %s467_s2, 4096 }
  0x20   :  { %p347_p13 = scmp.ne.s32.totalorder %s467_s2, %s346_s18  ;;  %p350_p0 = scmp.lt.u32.totalorder %s346_s18, %s467_s2 }
  0x22   :  { %p352_p1 = pnand %p350_p0, %p347_p13 }
  0x24   :  { %355 = shalt.err (!%p352_p1)
}
  0x25   :  { %s356_s23 = scalar_lea.vmem %s42_s30, 4096  ;;  %p361_p3 = scmp.lt.s32.totalorder %s42_s30, %s42_s30 }
  0x26   :  { %p357_p2 = scmp.ne.s32.totalorder %s42_s30, %s356_s23  ;;  %p362_p4 = scmp.lt.s32.totalorder %s356_s23, %s356_s23 }
  0x28   :  { %p363_p5 = por %p362_p4, %p361_p3 }
  0x2a   :  { %p364_p6 = pnand %p363_p5, %p357_p2 }
  0x2c   :  { %367 = shalt.err (!%p364_p6)
}
  0x2d   :  { %s377_s1 = smov 128   ;;  %s378_s24 = smov 8  }
  0x2e   :  { %47 = dma.hbm_to_vmem [thread:$0]  %s467_s2, 4096, %s42_s30, [#allocation8], %s377_s1, %s377_s1, %s378_s24  }
  0x2f   :  { %368 = dma.done.wait [#allocation5], 16  }
  0x30   :  { %369 = vsyncadd [#allocation5], 4294967280 }
  0x31   :  { %370 = dma.done.wait [#allocation4], 1024  }
  0x32   :  { %371 = vsyncadd [#allocation4], 4294966272 }
  0x33   :  { %372 = dma.done.wait [#allocation8], 4096  }
  0x34   :  { %373 = vsyncadd [#allocation8], 4294963200 }
  0x35   :  { %63 = sfence }
  0x36   :  { %v110_v1 = vld [vmem:[#allocation7 + $0x80] sm:$0xff]  ;;  %v111_v2 = vld [vmem:[#allocation7 + $0x88] sm:$0xff]  ;;  %s444_s27 = sld [smem:[#allocation3]]  ;;  %v112_v6 = vld [vmem:[#allocation7 + $0x90] sm:$0xff]  ;;  %s446_s28 = sld [smem:[#allocation3 + $0x1]]  ;;  %vm223_vm0 = vcmask 7168  }
  0x37   :  { %v94_v3 = vld [vmem:[#allocation7] sm:$0xff]  ;;  %v273_v4 = vpack.c.bf16 %v111_v2, %v110_v1  ;;  %v95_v5 = vld [vmem:[#allocation7 + $0x8] sm:$0xff]  ;;  %v113_v7 = vld [vmem:[#allocation7 + $0x98] sm:$0xff]  ;;  %s448_s2 = sld [smem:[#allocation3 + $0x2]]  ;;  %s450_s5 = sld [smem:[#allocation3 + $0x3]] }
  0x38   :  { %v275_v8 = vpack.c.bf16 %v95_v5, %v94_v3  ;;  %v277_v9 = vpack.c.bf16 %v113_v7, %v112_v6  ;;  %v96_v10 = vld [vmem:[#allocation7 + $0x10] sm:$0xff]  ;;  %v97_v11 = vld [vmem:[#allocation7 + $0x18] sm:$0xff]  ;;  %v114_v12 = vld [vmem:[#allocation7 + $0xa0] sm:$0xff] }
  0x39   :  { %274 = vmatprep.subr.bf16.mxu0 %v273_v4  ;;  %v115_v13 = vld [vmem:[#allocation7 + $0xa8] sm:$0xff]  ;;  %v279_v14 = vpack.c.bf16 %v97_v11, %v96_v10  ;;  %v98_v16 = vld [vmem:[#allocation7 + $0x20] sm:$0xff]  ;;  %v116_v18 = vld [vmem:[#allocation7 + $0xb0] sm:$0xff] }
  0x3a   :  { %276 = vmatpush3.bf16.msra.mxu0 %v275_v8  ;;  %v281_v15 = vpack.c.bf16 %v115_v13, %v114_v12  ;;  %v99_v17 = vld [vmem:[#allocation7 + $0x28] sm:$0xff]  ;;  %v117_v19 = vld [vmem:[#allocation7 + $0xb8] sm:$0xff]  ;;  %v100_v22 = vld [vmem:[#allocation7 + $0x30] sm:$0xff] }
  0x3b   :  { %278 = vmatprep.subr.bf16.mxu0 %v277_v9  ;;  %v283_v20 = vpack.c.bf16 %v99_v17, %v98_v16  ;;  %v285_v21 = vpack.c.bf16 %v117_v19, %v116_v18  ;;  %v101_v23 = vld [vmem:[#allocation7 + $0x38] sm:$0xff]  ;;  %v118_v26 = vld [vmem:[#allocation7 + $0xc0] sm:$0xff]  ;;  %v119_v27 = vld [vmem:[#allocation7 + $0xc8] sm:$0xff] }
  0x3c   :  { %v67_v24 = vstv %s444_s27  ;;  %v73_v25 = vstv %s446_s28  ;;  %v66_v29 = vld [vmem:[#allocation6 + $0x8] sm:$0xff]  ;;  %v72_v30 = vld [vmem:[#allocation6 + $0x18] sm:$0xff]  ;;  %v287_v32 = vpack.c.bf16 %v101_v23, %v100_v22  ;;  %v289_v36 = vpack.c.bf16 %v119_v27, %v118_v26  ;;  %v102_v37 = vld [vmem:[#allocation7 + $0x40] sm:$0xff] }
  0x3d   :  { %v81_v28 = vstv %s448_s2  ;;  %v89_v31 = vstv %s450_s5  ;;  %v69_v33 = vmul.f32 %v67_v24, %v66_v29  ;;  %v75_v34 = vmul.f32 %v73_v25, %v72_v30  ;;  %v80_v35 = vld [vmem:[#allocation6 + $0x28] sm:$0xff]  ;;  %v88_v40 = vld [vmem:[#allocation6 + $0x38] sm:$0xff]  ;;  %v120_v41 = vld [vmem:[#allocation7 + $0xd0] sm:$0xff] }
  0x3e   :  { %280 = vmatpush3.bf16.msra.mxu0 %v279_v14  ;;  %v103_v38 = vld [vmem:[#allocation7 + $0x48] sm:$0xff]  ;;  %v83_v39 = vmul.f32 %v81_v28, %v80_v35  ;;  %v121_v42 = vld [vmem:[#allocation7 + $0xd8] sm:$0xff]  ;;  %v91_v44 = vmul.f32 %v89_v31, %v88_v40  ;;  %v65_v46 = vld [vmem:[#allocation6] sm:$0xff] }
  0x3f   :  { %282 = vmatprep.subr.bf16.mxu0 %v281_v15  ;;  %v77_v43 = vadd.f32 %v75_v34, %v69_v33  ;;  %v291_v45 = vpack.c.bf16 %v103_v38, %v102_v37  ;;  %v71_v47 = vld [vmem:[#allocation6 + $0x10] sm:$0xff]  ;;  %v293_v49 = vpack.c.bf16 %v121_v42, %v120_v41  ;;  %v105_v51 = vld [vmem:[#allocation7 + $0x58] sm:$0xff]  ;;  %v122_v52 = vld [vmem:[#allocation7 + $0xe0] sm:$0xff]  ;;  %v68_v55 = vmul.f32 %v67_v24, %v65_v46 }
  0x40   :  { %v104_v50 = vld [vmem:[#allocation7 + $0x50] sm:$0xff]  ;;  %v123_v53 = vld [vmem:[#allocation7 + $0xe8] sm:$0xff]  ;;  %v74_v56 = vmul.f32 %v73_v25, %v71_v47  ;;  %v79_v58 = vld [vmem:[#allocation6 + $0x20] sm:$0xff] }
  0x41   :  { %v85_v48 = vadd.f32 %v83_v39, %v77_v43  ;;  %v295_v57 = vpack.c.bf16 %v105_v51, %v104_v50  ;;  %v297_v59 = vpack.c.bf16 %v123_v53, %v122_v52  ;;  %v106_v60 = vld [vmem:[#allocation7 + $0x60] sm:$0xff]  ;;  %v107_v61 = vld [vmem:[#allocation7 + $0x68] sm:$0xff]  ;;  %v124_v62 = vld [vmem:[#allocation7 + $0xf0] sm:$0xff]  ;;  %v82_v0 = vmul.f32 %v81_v28, %v79_v58 }
  0x42   :  { %284 = vmatpush3.bf16.msra.mxu0 %v283_v20  ;;  %v125_v63 = vld [vmem:[#allocation7 + $0xf8] sm:$0xff]  ;;  %v76_v1 = vadd.f32 %v74_v56, %v68_v55  ;;  %v299_v2 = vpack.c.bf16 %v107_v61, %v106_v60  ;;  %v87_v3 = vld [vmem:[#allocation6 + $0x30] sm:$0xff] }
  0x43   :  { %286 = vmatprep.subr.bf16.mxu0 %v285_v21  ;;  %v93_v54 = vadd.f32 %v91_v44, %v85_v48  ;;  %v301_v4 = vpack.c.bf16 %v125_v63, %v124_v62  ;;  %v108_v5 = vld [vmem:[#allocation7 + $0x70] sm:$0xff]  ;;  %v109_v6 = vld [vmem:[#allocation7 + $0x78] sm:$0xff]  ;;  %v90_v7 = vmul.f32 %v89_v31, %v87_v3 }
  0x44   :  { %v84_v8 = vadd.f32 %v82_v0, %v76_v1  ;;  %v303_v9 = vpack.c.bf16 %v109_v6, %v108_v5  ;;  %v235_v13 = vld [vmem:[%s468_s3] ss:$0 sm:$0xff] }
  0x45   :  { %197 = vmatprep.mubr.f32.mxu0 %v93_v54  ;;  %v236_v16 = vld [vmem:[%s469_s4] ss:$0 sm:$0xff] }
  0x46   :  { %288 = vmatpush3.bf16.msra.mxu0 %v287_v32  ;;  %v92_v10 = vadd.f32 %v90_v7, %v84_v8  ;;  %v237_v19 = vld [vmem:[#allocation2] ss:$0 sm:$0xff] }
  0x47   :  { %290 = vmatprep.subr.bf16.mxu0 %v289_v36 }
  0x4a   :  { %292 = vmatpush3.bf16.msra.mxu0 %v291_v45 }
  0x4b   :  { %294 = vmatprep.subr.bf16.mxu0 %v293_v49 }
  0x4e   :  { %296 = vmatpush3.bf16.msra.mxu0 %v295_v57 }
  0x4f   :  { %298 = vmatprep.subr.bf16.mxu0 %v297_v59 }
  0x52   :  { %300 = vmatpush3.bf16.msra.mxu0 %v299_v2 }
  0x53   :  { %302 = vmatprep.subr.bf16.mxu0 %v301_v4 }
  0x56   :  { %304 = vmatpush3.bf16.msra.mxu0 %v303_v9 }
  0x59   :  { %198 = vmatmul.mubr.f32.vlgmr.msra.gmra.mrb[0].mxu0 %v92_v10 }
 0x12c   :  { %v270_v11 = vpop.f32.mrb[0].mxu0 }
 0x12d   :  { %v271_v12 = vpop.f32.mrb[1].mxu0 }
 0x12e   :  { %v272_v14 = vadd.f32 %v271_v12, %v270_v11 }
 0x130   :  { %v200_v15 = vadd.f32 %v272_v14, %v235_v13 }
 0x132   :  { %v203_v17 = vmax.f32 %v200_v15, 0.0 }
 0x134   :  { %v211_v18 = vmul.f32 %v236_v16, %v203_v17 }
 0x136   :  { %212 = vadd.xlane.f32.xlu0 %v211_v18 }
 0x1c3   :  { %v213_v20 = vpop.xlane.xlu0 %212 }
 0x1c4   :  { %v221_v21 = vadd.f32 %v237_v19, %v213_v20 }
 0x1c6   :  { %310 = vtanh.f32 %v221_v21 }
 0x1d0   :  { %v311_v22 = vpop.eup %310 }
 0x1d1   :  { %224 = vst.msk [vmem:[%s471_s6] sm:$0xff] %vm223_vm0, %v311_v22 }
 0x1d2   :  { %229 = vsyncpa [#allocation4], 1 }
 0x1d3   :  { %230 = vsyncpa [#allocation8], 1 }
 0x1d4   :  { %231 = vsyncpa [#allocation5], 1 }

</bundles_post_ra>
